<compile_context>
chip_gen: v7x
topology: tpu7x:2x2x1
jax: 0.10.0
libtpu: 0.0.40
codegen_flags: <defaults>
</compile_context>

<pallas_src>
import jax
import jax.numpy as jnp
from jax.experimental import pallas as pl
from jax.experimental.pallas import tpu as pltpu

LANE = 128          # vreg lane width: output feature dims padded to this
SUBLANE_BF16 = 16   # bf16 sublane packing: batch tile / contraction dims padded to this


def _round_up(n: int, m: int) -> int:
    return ((n + m - 1) // m) * m


def _pad2d(a, rows, cols):
    pr, pc = rows - a.shape[0], cols - a.shape[1]
    if pr == 0 and pc == 0:
        return a
    return jnp.pad(a, ((0, pr), (0, pc)))


def _make_fused_mlp_kernel(n_layers: int):
    """refs = (x, w0, b0, ..., w{n-1}, b{n-1}, out). Weights are bf16, VMEM-resident."""
    def kernel(*refs):
        x_ref = refs[0]
        o_ref = refs[-1]
        p_refs = refs[1:-1]
        h = x_ref[...]                              # f32 (TB, in_pad)
        for i in range(n_layers):
            w = p_refs[2 * i][...]                  # bf16 (in_pad_i, out_pad_i)
            b = p_refs[2 * i + 1][...]              # f32  (1, out_pad_i), broadcasts
            h = jnp.dot(h.astype(jnp.bfloat16), w,
                        preferred_element_type=jnp.float32) + b
            if i < n_layers - 1:                    # ReLU after every layer but last
                h = jnp.maximum(h, 0.0)
        o_ref[...] = h.astype(o_ref.dtype)          # lane-dense (TB, out_pad) store
    return kernel


def fused_mlp_call(x_p, padded_params, *, block_batch, vmem_limit_bytes, cost):
    """Single pallas_call over a batch-tiled grid; all layers fused, activations
    never leave VMEM/vregs.  x_p: (B, in_pad) f32; weights bf16; biases f32."""
    n_layers = len(padded_params)
    B, in_pad = x_p.shape
    out_pad = padded_params[-1][0].shape[1]

    flat = []
    in_specs = [pl.BlockSpec((block_batch, in_pad), lambda i: (i, 0))]
    for w, b in padded_params:
        flat.extend((w, b))
        in_specs.append(pl.BlockSpec(w.shape, lambda i: (0, 0)))   # VMEM-resident
        in_specs.append(pl.BlockSpec(b.shape, lambda i: (0, 0)))   # VMEM-resident
    out_spec = pl.BlockSpec((block_batch, out_pad), lambda i: (i, 0))

    return pl.pallas_call(
        _make_fused_mlp_kernel(n_layers),
        out_shape=jax.ShapeDtypeStruct((B, out_pad), jnp.float32),
        grid=(pl.cdiv(B, block_batch),),
        in_specs=in_specs,
        out_specs=out_spec,
        compiler_params=pltpu.CompilerParams(
            dimension_semantics=("parallel",),       # v7x megacore; no-op on v5e/v6e
            vmem_limit_bytes=vmem_limit_bytes),
        cost_estimate=cost,
    )(x_p, *flat)


def init_mlp_params(key, n_in, hidden_layers, n_out):
    """Matches the PyTorch module init: xavier_uniform_ weights, bias = 0.01.
    Weights stored as (in, out) so forward is x @ W + b (== x @ W_pt.T + b)."""
    layers_in = [n_in] + list(hidden_layers)
    layers_out = list(hidden_layers) + [n_out]
    params = []
    for fan_in, fan_out in zip(layers_in, layers_out):
        key, sub = jax.random.split(key)
        bound = jnp.sqrt(6.0 / (fan_in + fan_out))
        w = jax.random.uniform(sub, (fan_in, fan_out), jnp.float32, -bound, bound)
        b = jnp.full((1, fan_out), 0.01, dtype=jnp.float32)
        params.append((w, b))
    return params


def pad_params(params, n_in):
    """Zero-pad: contraction (in) dims -> multiples of 16 (bf16 sublane), output
    (out) dims -> multiples of 128 lanes.  Weights cast to bf16, biases stay f32.
    Zero padding keeps the math exact: padded input columns hit zero weight rows,
    padded output columns get 0 bias and ReLU(0)=0, and are sliced away at the end."""
    prev = _round_up(n_in, SUBLANE_BF16)
    padded = []
    for w, b in params:
        in_pad = prev
        out_pad = _round_up(w.shape[1], LANE)
        w_p = _pad2d(w, in_pad, out_pad).astype(jnp.bfloat16)
        b_p = _pad2d(b, 1, out_pad)
        padded.append((w_p, b_p))
        prev = out_pad
    return padded


def make_mlp_forward(params, *, block_batch=None):
    """Returns a jitted forward(x) running the whole MLP in one fused Pallas kernel."""
    n_in = params[0][0].shape[0]
    n_out = params[-1][0].shape[1]
    in_pad = _round_up(n_in, SUBLANE_BF16)
    padded_params = pad_params(params, n_in)
    out_pad = padded_params[-1][0].shape[1]

    # Bytes of the VMEM-resident weight/bias set (constant across grid steps).
    w_bytes = sum(int(w.size) * w.dtype.itemsize + int(b.size) * b.dtype.itemsize
                  for w, b in padded_params)
    widest_act = max([in_pad] + [w.shape[1] for w, _ in padded_params])

    @jax.jit
    def forward(x):
        B = x.shape[0]
        tb = block_batch if block_batch is not None else min(256, _round_up(B, SUBLANE_BF16))
        tb = max(SUBLANE_BF16, _round_up(tb, SUBLANE_BF16))

        # VMEM budget: resident weights + double-buffered x/out tiles + live activations.
        budget = (w_bytes
                  + 2 * tb * in_pad * 4
                  + 2 * tb * out_pad * 4
                  + 2 * tb * widest_act * 4)
        vmem_limit = min(max(2 * budget, 4 << 20), 48 << 20)   # headroom, v7x-safe cap

        cost = pl.CostEstimate(
            flops=2 * B * sum(w.shape[0] * w.shape[1] for w, _ in padded_params),
            transcendentals=0,
            bytes_accessed=(B * in_pad * 4 + w_bytes + B * out_pad * 4),
        )

        x_p = _pad2d(x, B, in_pad) if x.shape[1] != in_pad else x
        y_pad = fused_mlp_call(x_p, padded_params,
                               block_batch=tb, vmem_limit_bytes=vmem_limit, cost=cost)
        return y_pad[:, :n_out]

    return forward


def mlp_reference(params, x):
    """Pure-JAX f32 reference on the original (unpadded) params."""
    n_layers = len(params)
    for idx, (w, b) in enumerate(params):
        x = x @ w + b
        if idx < n_layers - 1:
            x = jnp.maximum(x, 0.0)
    return x


if __name__ == "__main__":
    # Small shapes consistent with an MLP classification head.
    batch = 40                  # not a multiple of the 16-row batch tile -> exercises
    n_in = 32                   # the ragged last grid block (masked output DMA).
    hidden_layers = [64, 48]
    n_out = 16

    key = jax.random.PRNGKey(0)
    key, xkey = jax.random.split(key)
    x = jax.random.normal(xkey, (batch, n_in), dtype=jnp.float32)

    params = init_mlp_params(key, n_in, hidden_layers, n_out)
    forward = make_mlp_forward(params, block_batch=16)   # grid=(3,), pipelined over batch

    out = jax.block_until_ready(forward(x))
    ref = mlp_reference(params, x)

    assert out.shape == (batch, n_out)
    # bf16 MXU inputs (f32 accumulation) -> loosened tolerance vs the f32 reference.
    assert jnp.allclose(out, ref, atol=3e-2, rtol=3e-2), float(jnp.max(jnp.abs(out - ref)))

    print("KERNEL_OK")
</pallas_src>

<mosaic_0001>
module attributes {stable_mosaic.version = 11 : i64} {
  func.func @kernel(%arg0: i32, %arg1: memref<16x32xf32, #tpu.memory_space<vmem>>, %arg2: memref<32x128xbf16, #tpu.memory_space<vmem>>, %arg3: memref<1x128xf32, #tpu.memory_space<vmem>>, %arg4: memref<128x128xbf16, #tpu.memory_space<vmem>>, %arg5: memref<1x128xf32, #tpu.memory_space<vmem>>, %arg6: memref<128x128xbf16, #tpu.memory_space<vmem>>, %arg7: memref<1x128xf32, #tpu.memory_space<vmem>>, %arg8: memref<16x128xf32, #tpu.memory_space<vmem>>) attributes {dimension_semantics = [#tpu.dimension_semantics<parallel>], iteration_bounds = array<i64: 3>, scalar_prefetch = 0 : i64, scratch_operands = 0 : i64, tpu.core_type = #tpu.core_type<tc>, window_params = [{transform_indices = @transform_0, window_bounds = array<i64: 16, 32>}, {pipeline_mode = #tpu.pipeline_mode<synchronous>, transform_indices = @transform_1, window_bounds = array<i64: 32, 128>}, {pipeline_mode = #tpu.pipeline_mode<synchronous>, transform_indices = @transform_2, window_bounds = array<i64: 1, 128>}, {pipeline_mode = #tpu.pipeline_mode<synchronous>, transform_indices = @transform_3, window_bounds = array<i64: 128, 128>}, {pipeline_mode = #tpu.pipeline_mode<synchronous>, transform_indices = @transform_4, window_bounds = array<i64: 1, 128>}, {pipeline_mode = #tpu.pipeline_mode<synchronous>, transform_indices = @transform_5, window_bounds = array<i64: 128, 128>}, {pipeline_mode = #tpu.pipeline_mode<synchronous>, transform_indices = @transform_6, window_bounds = array<i64: 1, 128>}, {transform_indices = @transform_7, window_bounds = array<i64: 16, 128>}]} {
    %c0 = arith.constant 0 : index
    %c0_0 = arith.constant 0 : index
    %0 = vector.load %arg1[%c0, %c0_0] : memref<16x32xf32, #tpu.memory_space<vmem>>, vector<16x32xf32>
    %c0_1 = arith.constant 0 : index
    %c0_2 = arith.constant 0 : index
    %1 = vector.load %arg2[%c0_1, %c0_2] : memref<32x128xbf16, #tpu.memory_space<vmem>>, vector<32x128xbf16>
    %c0_3 = arith.constant 0 : index
    %c0_4 = arith.constant 0 : index
    %2 = vector.load %arg3[%c0_3, %c0_4] : memref<1x128xf32, #tpu.memory_space<vmem>>, vector<1x128xf32>
    %3 = arith.truncf %0 : vector<16x32xf32> to vector<16x32xbf16>
    %cst = arith.constant dense<0.000000e+00> : vector<16x128xf32>
    %4 = tpu.matmul %3, %1, %cst {dimension_numbers = #tpu.dot_dimension_numbers<[1], [0], [0], [1], [0, 0, 1, 1], [], []>} : vector<16x32xbf16>, vector<32x128xbf16>, vector<16x128xf32> -> vector<16x128xf32>
    %5 = vector.broadcast %2 : vector<1x128xf32> to vector<16x128xf32>
    %6 = arith.addf %4, %5 : vector<16x128xf32>
    %cst_5 = arith.constant 0.000000e+00 : f32
    %7 = vector.broadcast %cst_5 : f32 to vector<16x128xf32>
    %8 = arith.maximumf %6, %7 : vector<16x128xf32>
    %c0_6 = arith.constant 0 : index
    %c0_7 = arith.constant 0 : index
    %9 = vector.load %arg4[%c0_6, %c0_7] : memref<128x128xbf16, #tpu.memory_space<vmem>>, vector<128x128xbf16>
    %c0_8 = arith.constant 0 : index
    %c0_9 = arith.constant 0 : index
    %10 = vector.load %arg5[%c0_8, %c0_9] : memref<1x128xf32, #tpu.memory_space<vmem>>, vector<1x128xf32>
    %11 = arith.truncf %8 : vector<16x128xf32> to vector<16x128xbf16>
    %cst_10 = arith.constant dense<0.000000e+00> : vector<16x128xf32>
    %12 = tpu.matmul %11, %9, %cst_10 {dimension_numbers = #tpu.dot_dimension_numbers<[1], [0], [0], [1], [0, 0, 1, 1], [], []>} : vector<16x128xbf16>, vector<128x128xbf16>, vector<16x128xf32> -> vector<16x128xf32>
    %13 = vector.broadcast %10 : vector<1x128xf32> to vector<16x128xf32>
    %14 = arith.addf %12, %13 : vector<16x128xf32>
    %cst_11 = arith.constant 0.000000e+00 : f32
    %15 = vector.broadcast %cst_11 : f32 to vector<16x128xf32>
    %16 = arith.maximumf %14, %15 : vector<16x128xf32>
    %c0_12 = arith.constant 0 : index
    %c0_13 = arith.constant 0 : index
    %17 = vector.load %arg6[%c0_12, %c0_13] : memref<128x128xbf16, #tpu.memory_space<vmem>>, vector<128x128xbf16>
    %c0_14 = arith.constant 0 : index
    %c0_15 = arith.constant 0 : index
    %18 = vector.load %arg7[%c0_14, %c0_15] : memref<1x128xf32, #tpu.memory_space<vmem>>, vector<1x128xf32>
    %19 = arith.truncf %16 : vector<16x128xf32> to vector<16x128xbf16>
    %cst_16 = arith.constant dense<0.000000e+00> : vector<16x128xf32>
    %20 = tpu.matmul %19, %17, %cst_16 {dimension_numbers = #tpu.dot_dimension_numbers<[1], [0], [0], [1], [0, 0, 1, 1], [], []>} : vector<16x128xbf16>, vector<128x128xbf16>, vector<16x128xf32> -> vector<16x128xf32>
    %21 = vector.broadcast %18 : vector<1x128xf32> to vector<16x128xf32>
    %22 = arith.addf %20, %21 : vector<16x128xf32>
    %c0_17 = arith.constant 0 : index
    %c0_18 = arith.constant 0 : index
    %23 = vector.load %arg8[%c0_17, %c0_18] : memref<16x128xf32, #tpu.memory_space<vmem>>, vector<16x128xf32>
    tpu.vector_store %arg8[%c0_17, %c0_18], %22 {strides = array<i32>} : memref<16x128xf32, #tpu.memory_space<vmem>>, vector<16x128xf32>,
    return
  }
  func.func @transform_0(%arg0: i32) -> (i32, i32) {
    %c0_i32 = arith.constant 0 : i32
    %c0_i32_0 = arith.constant 0 : i32
    return %arg0, %c0_i32 : i32, i32
  }
  func.func @transform_1(%arg0: i32) -> (i32, i32) {
    %c0_i32 = arith.constant 0 : i32
    %c0_i32_0 = arith.constant 0 : i32
    %c0_i32_1 = arith.constant 0 : i32
    return %c0_i32, %c0_i32_0 : i32, i32
  }
  func.func @transform_2(%arg0: i32) -> (i32, i32) {
    %c0_i32 = arith.constant 0 : i32
    %c0_i32_0 = arith.constant 0 : i32
    %c0_i32_1 = arith.constant 0 : i32
    return %c0_i32, %c0_i32_0 : i32, i32
  }
  func.func @transform_3(%arg0: i32) -> (i32, i32) {
    %c0_i32 = arith.constant 0 : i32
    %c0_i32_0 = arith.constant 0 : i32
    %c0_i32_1 = arith.constant 0 : i32
    return %c0_i32, %c0_i32_0 : i32, i32
  }
  func.func @transform_4(%arg0: i32) -> (i32, i32) {
    %c0_i32 = arith.constant 0 : i32
    %c0_i32_0 = arith.constant 0 : i32
    %c0_i32_1 = arith.constant 0 : i32
    return %c0_i32, %c0_i32_0 : i32, i32
  }
  func.func @transform_5(%arg0: i32) -> (i32, i32) {
    %c0_i32 = arith.constant 0 : i32
    %c0_i32_0 = arith.constant 0 : i32
    %c0_i32_1 = arith.constant 0 : i32
    return %c0_i32, %c0_i32_0 : i32, i32
  }
  func.func @transform_6(%arg0: i32) -> (i32, i32) {
    %c0_i32 = arith.constant 0 : i32
    %c0_i32_0 = arith.constant 0 : i32
    %c0_i32_1 = arith.constant 0 : i32
    return %c0_i32, %c0_i32_0 : i32, i32
  }
  func.func @transform_7(%arg0: i32) -> (i32, i32) {
    %c0_i32 = arith.constant 0 : i32
    %c0_i32_0 = arith.constant 0 : i32
    return %arg0, %c0_i32 : i32, i32
  }
}

</mosaic_0001>

<bundles_post_ra>
// kernel: forward.1
= control target key start
LH: loop header
LB: loop body
LE: loop exit
PB: predicated region body
PF: predicated region fallthrough
CT: control target
= control target key end

     0   :  { %12 = vsyncpa [#allocation3], 0  ;;  %s1256_s24 = smov 0   ;;  %s1258_s25 = smov 0   ;;  %s1437_s0 = inlined_call_operand.vmem [shape: f32[40,32], index: 0, kind: input, shape index: {}]   ;;  %s1438_s1 = inlined_call_operand.vmem [shape: bf16[32,128], index: 1, kind: input, shape index: {}]   ;;  %s1439_s2 = inlined_call_operand.vmem [shape: f32[1,128], index: 2, kind: input, shape index: {}]   ;;  %s1440_s3 = inlined_call_operand.hbm [shape: bf16[128,128], index: 3, kind: input, shape index: {}]   ;;  %s1441_s4 = inlined_call_operand.vmem [shape: f32[1,128], index: 4, kind: input, shape index: {}]   ;;  %s1442_s5 = inlined_call_operand.vmem [shape: bf16[128,128], index: 5, kind: input, shape index: {}]   ;;  %s1443_s6 = inlined_call_operand.vmem [shape: f32[1,128], index: 6, kind: input, shape index: {}]   ;;  %s1444_s7 = inlined_call_operand.vmem [shape: f32[40,128], index: 7, kind: output, shape index: {}]  }
   0x1   :  { %s1260_s26 = smov 0  }
   0x2 LB: > { %s1269_s27 = sadd.s32 4294967295, %s1177_s26   ;;  %s1271_s28 = sadd.s32 1, %s1177_s26   ;;  %s1177_s26 = sphi %s1260_s26, %s1456_s26   ;;  %s1173_s25 = sphi %s1258_s25, %s1455_s25   ;;  %s1169_s24 = sphi %s1256_s24, %s1454_s24  }
   0x3   : > { %s174_s29 = ssub.s32 %s1177_s26, %s1271_s28  ;;  %s177_s30 = sadd.s32 1, %s1173_s25 }
   0x4   : > { %p175_p0 = scmp.eq.s32.totalorder %s174_s29, 0  ;;  %p187_p1 = scmp.ne.s32.totalorder %s1173_s25, %s1169_s24 }
   0x5   : > { %p188_p2 = scmp.eq.s32.totalorder %s1269_s27, 2  ;;  %p851_p3 = scmp.ge.s32.totalorder %s1177_s26, 1 }
   0x6   : > { %s1279_s8 = scalar_select %p175_p0, %s1173_s25, %s177_s30  }
   0x7   : > { %p1281_p4 = por %p188_p2, %p187_p1  ;;  %p201_p5 = scmp.lt.s32.totalorder %s1177_s26, 4 }
   0x8   : > { %p1445_p6 = scmp.eq.s32.totalorder %s1269_s27, 0  ;;  %s1211_s11 = smov [#allocation2]  }
   0x9   : > { %s1447_s9 = scalar_select %p1281_p4, 1, 0 }
   0xa   : > { %p1286_p7 = pnand %p851_p3, %p201_p5  ;;  %s219_s12 = sshll.u32 %s1211_s11, 4  ;;  %s220_s12 = int_to_ptr.vmem [resolvable:$true] %s219_s12 }
   0xb   : > { %s1091_s16 = scalar_lea.hbm %s1440_s3, 1024 }
   0xc   : > { %s1448_s10 = scalar_select %p1286_p7, 1, 0 }
   0xd   : > { %p974_p8 = pneg %p1286_p7  ;;  %p1092_p10 = scmp.ne.s32.totalorder %s1440_s3, %s1091_s16 }
   0xe   : > { %p1098_p0 = scmp.lt.u32.totalorder %s1091_s16, %s1440_s3 }
   0xf   : > { %p1294_p9 = pnand %p1445_p6, %p974_p8 }
  0x11   : > { %p1093_p11 = pneg %p1294_p9 }
  0x13   : > { %p1094_p12 = pnand %p1093_p11, %p1092_p10 }
  0x15   : > { %p1095_p13 = pneg %p1094_p12 }
  0x17   : > { %p1100_p1 = pnand %p1098_p0, %p1095_p13 }
  0x19   : > { %1103 = shalt.err (!%p1100_p1)
}
  0x1a   : > { %s1104_s21 = scalar_lea.vmem %s220_s12, 1024  ;;  %p1112_p8 = scmp.lt.s32.totalorder %s220_s12, %s220_s12 }
  0x1b   : > { %p1105_p2 = scmp.ne.s32.totalorder %s220_s12, %s1104_s21  ;;  %p1113_p6 = scmp.lt.s32.totalorder %s1104_s21, %s1104_s21 }
  0x1d   : > { %p1107_p3 = pnand %p1105_p2, %p1093_p11  ;;  %p1114_p4 = por %p1113_p6, %p1112_p8 }
  0x1f   : > { %p1108_p5 = pneg %p1107_p3 }
  0x21   : > { %p1115_p7 = pnand %p1114_p4, %p1108_p5 }
  0x23   : > { %1118 = shalt.err (!%p1115_p7)
}
  0x24   : > { %s1212_s22 = smov 64   ;;  %s1213_s23 = smov 4  }
  0x25   : > { %977 = dma.hbm_to_vmem [thread:$0]  (!%p1294_p9), %s1440_s3, 1024, %s220_s12, [#allocation3], %s1212_s22, %s1212_s22, %s1213_s23  }
  0x26   : > { %p1450_p10 = scmp.ne.s32.totalorder %s1448_s10, 0 }
  0x27   : > { %p1451_p12 = scmp.eq.s32.totalorder (!%p1450_p10), %s1269_s27, 0 }
  0x28   : > { %261 = sbr.rel (%p1450_p10) target bundleno = 764 (0x2fc), region = 48 }
  0x2f   : > { %1164 = dma.done.wait (%p1451_p12), [#allocation3], 1024   ;;  %p1452_p11 = pmov %p1451_p12 }
  0x30   : > { %s1321_s30 = sshll.u32 %s1269_s27, 1  ;;  %v1214_v0 = vmov 0.0   ;;  %vm1215_vm0 = vmmov 0   ;;  %v1073_v1 = vld [vmem:[%s1438_s1] sm:$0xff]   ;;  %v1074_v2 = vld [vmem:[%s1438_s1 + $0x8] sm:$0xff]   ;;  %vm342_vm1 = vcmask 261120  }
  0x31   : > { %1166 = vsyncadd (%p1452_p11), [#allocation3], 4294966272  ;;  %922 = vmatprep.subr.bf16.mxu0 %v1214_v0  ;;  %926 = vmatprep.mubr.msk.bf16.mxu0 %vm1215_vm0, %v1214_v0  ;;  %p301_p4 = scmp.lt.s32.totalorder %s1321_s30, 4  ;;  %v1075_v5 = vld [vmem:[#allocation2] sm:$0xff]   ;;  %v1076_v7 = vld [vmem:[#allocation2 + $0x8] sm:$0xff]   ;;  %s293_s23 = sand.u32 1, %s1169_s24  }
  0x32   : > { %930 = vmatprep.subr.bf16.mxu1 %v1214_v0  ;;  %946 = vmatprep.mubr.msk.bf16.mxu1 %vm1215_vm0, %v1214_v0  ;;  %v1077_v8 = vld [vmem:[#allocation2 + $0x10] sm:$0xff]   ;;  %v1078_v9 = vld [vmem:[#allocation2 + $0x18] sm:$0xff]   ;;  %v1079_v10 = vld [vmem:[#allocation2 + $0x20] sm:$0xff]   ;;  %s856_s26 = sshll.u32 %s293_s23, 4  ;;  %p1453_p6 = scmp.ne.s32.totalorder %s1447_s9, 0 }
  0x33   : > { %s302_s10 = scalar_select %p301_p4, %s1321_s30, 4  ;;  %923 = vmatpush3.bf16.msra.mxu0 %v1073_v1  ;;  %931 = vmatpush3.bf16.msra.mxu1 %v1075_v5  ;;  %v1080_v11 = vld [vmem:[#allocation2 + $0x28] sm:$0xff]   ;;  %v1081_v12 = vld [vmem:[#allocation2 + $0x30] sm:$0xff]   ;;  %v1082_v13 = vld [vmem:[#allocation2 + $0x38] sm:$0xff]  }
  0x34   : > { %924 = vmatprep.subr.bf16.mxu0 %v1214_v0  ;;  %932 = vmatprep.subr.bf16.mxu1 %v1214_v0  ;;  %v1083_v14 = vld [vmem:[%s1442_s5] sm:$0xff]   ;;  %v1084_v15 = vld [vmem:[%s1442_s5 + $0x8] sm:$0xff]   ;;  %v1085_v16 = vld [vmem:[%s1442_s5 + $0x10] sm:$0xff]   ;;  %s627_s24 = ssub.s32 (%p1453_p6), 5, %s1321_s30  ;;  %s898_s12 = sshll.u32 (%p1453_p6), %s1269_s27, 4 }
  0x35   : > { %s858_s11 = sshll.u32 %s302_s10, 3  ;;  %v1086_v17 = vld [vmem:[%s1442_s5 + $0x18] sm:$0xff]   ;;  %v1087_v18 = vld [vmem:[%s1442_s5 + $0x20] sm:$0xff]   ;;  %v1088_v19 = vld [vmem:[%s1442_s5 + $0x28] sm:$0xff]   ;;  %p628_p7 = scmp.lt.s32.totalorder (%p1453_p6), %s627_s24, 2 }
  0x36   : > { %s304_s14 = scalar_lea.vmem %s1437_s0, %s858_s11  ;;  %v859_v20 = vld [vmem:[%s1439_s2] ss:$0 sm:$0xff]  ;;  %v1089_v30 = vld [vmem:[%s1442_s5 + $0x30] sm:$0xff]   ;;  %v1090_v31 = vld [vmem:[%s1442_s5 + $0x38] sm:$0xff]   ;;  %s1392_s11 = scalar_lea.vmem [#allocation4], %s856_s26  }
  0x37   : > { %v316_v3 = vld [vmem:[%s304_s14] sm:$0xff]  ;;  %v317_v4 = vld [vmem:[%s304_s14 + $0x8] sm:$0xff]  ;;  %925 = vmatpush3.bf16.msra.mxu0 %v1074_v2  ;;  %933 = vmatpush3.bf16.msra.mxu1 %v1076_v7  ;;  %s1403_s15 = scalar_lea.vmem (%p1453_p6), %s1444_s7, %s898_s12  }
  0x38   : > { %v323_v6 = vpack.c.bf16 %v317_v4, %v316_v3  ;;  %950 = vmatprep.subr.bf16.mxu0 %v1214_v0  ;;  %934 = vmatprep.subr.bf16.mxu1 %v1214_v0  ;;  %v863_v32 = vld [vmem:[%s1441_s4] ss:$0 sm:$0xff] }
  0x39   : > { %v872_v42 = vld [vmem:[%s1443_s6] ss:$0 sm:$0xff] }
  0x3a   : > { %927 = vmatmul.mubr.msk.bf16.vlgmr.msra.gmra.mrb[0].mxu0 %vm342_vm1, %v323_v6 }
  0x3b   : > { %966 = vmatprep.mubr.msk.bf16.mxu0 %vm1215_vm0, %v1214_v0  ;;  %935 = vmatpush3.bf16.msra.mxu1 %v1077_v8 }
  0x3c   : > { %936 = vmatprep.subr.bf16.mxu1 %v1214_v0  ;;  %951 = vmatpush3.bf16.msra.mxu0 %v1083_v14 }
  0x3d   : > { %952 = vmatprep.subr.bf16.mxu0 %v1214_v0 }
  0x3f   : > { %937 = vmatpush3.bf16.msra.mxu1 %v1078_v9 }
  0x40   : > { %938 = vmatprep.subr.bf16.mxu1 %v1214_v0  ;;  %953 = vmatpush3.bf16.msra.mxu0 %v1084_v15 }
  0x41   : > { %954 = vmatprep.subr.bf16.mxu0 %v1214_v0 }
  0x43   : > { %939 = vmatpush3.bf16.msra.mxu1 %v1079_v10 }
  0x44   : > { %940 = vmatprep.subr.bf16.mxu1 %v1214_v0  ;;  %955 = vmatpush3.bf16.msra.mxu0 %v1085_v16 }
  0x45   : > { %956 = vmatprep.subr.bf16.mxu0 %v1214_v0 }
  0x47   : > { %941 = vmatpush3.bf16.msra.mxu1 %v1080_v11 }
  0x48   : > { %942 = vmatprep.subr.bf16.mxu1 %v1214_v0  ;;  %957 = vmatpush3.bf16.msra.mxu0 %v1086_v17 }
  0x49   : > { %958 = vmatprep.subr.bf16.mxu0 %v1214_v0 }
  0x4b   : > { %943 = vmatpush3.bf16.msra.mxu1 %v1081_v12 }
  0x4c   : > { %944 = vmatprep.subr.bf16.mxu1 %v1214_v0  ;;  %959 = vmatpush3.bf16.msra.mxu0 %v1087_v18 }
  0x4d   : > { %960 = vmatprep.subr.bf16.mxu0 %v1214_v0 }
  0x4f   : > { %945 = vmatpush3.bf16.msra.mxu1 %v1082_v13 }
  0x50   : > { %961 = vmatpush3.bf16.msra.mxu0 %v1088_v19 }
  0x51   : > { %962 = vmatprep.subr.bf16.mxu0 %v1214_v0 }
  0x54   : > { %963 = vmatpush3.bf16.msra.mxu0 %v1089_v30 }
  0x55   : > { %964 = vmatprep.subr.bf16.mxu0 %v1214_v0 }
  0x58   : > { %965 = vmatpush3.bf16.msra.mxu0 %v1090_v31 }
 0x10d   : > { %v380_v21 = vpop.f32.mrb[0].mxu0 }
 0x10e   : > { %v381_v22 = vadd.f32 %v859_v20, %v380_v21  ;;  %v928_v23 = vpop.f32.mrb[1].mxu0 }
 0x10f   : > { %v383_v24 = vpop.f32.mrb[2].mxu0 }
 0x110   : > { %v384_v25 = vadd.f32 %v859_v20, %v383_v24  ;;  %v929_v26 = vpop.f32.mrb[3].mxu0  ;;  %v387_v27 = vmax.f32 %v381_v22, 0.0 }
 0x112   : > { %v388_v28 = vmax.f32 %v384_v25, 0.0 }
 0x114   : > { %v406_v29 = vpack.c.bf16 %v388_v28, %v387_v27 }
 0x116   : > { %947 = vmatmul.mubr.bf16.vlgmr.msra.gmra.mrb[0].mxu1 %v406_v29 }
 0x1e9   : > { %v495_v33 = vpop.f32.mrb[0].mxu1 }
 0x1ea   : > { %v496_v34 = vadd.f32 %v863_v32, %v495_v33  ;;  %v948_v35 = vpop.f32.mrb[1].mxu1 }
 0x1eb   : > { %v498_v36 = vpop.f32.mrb[2].mxu1 }
 0x1ec   : > { %v499_v37 = vadd.f32 %v863_v32, %v498_v36  ;;  %v949_v38 = vpop.f32.mrb[3].mxu1  ;;  %v502_v39 = vmax.f32 %v496_v34, 0.0 }
 0x1ee   : > { %v503_v40 = vmax.f32 %v499_v37, 0.0 }
 0x1f0   : > { %v521_v41 = vpack.c.bf16 %v503_v40, %v502_v39 }
 0x1f2   : > { %967 = vmatmul.mubr.bf16.vlgmr.msra.gmra.mrb[4].mxu0 %v521_v41 }
 0x2c4   : > { %625 = sbr.rel (!%p1453_p6) target bundleno = 764 (0x2fc), region = 56 }
 0x2c5   : > { %v610_v43 = vpop.f32.mrb[4].mxu0 }
 0x2c6   : > { %v611_v44 = vadd.f32 %v872_v42, %v610_v43  ;;  %v968_v45 = vpop.f32.mrb[5].mxu0 }
 0x2c7   : > { %v613_v46 = vpop.f32.mrb[6].mxu0 }
 0x2c8   : > { %617 = vst [vmem:[%s1392_s11] sm:$0xff] %v611_v44  ;;  %v614_v47 = vadd.f32 %v872_v42, %v613_v46  ;;  %v969_v48 = vpop.f32.mrb[7].mxu0 }
 0x2ca   : > { %618 = vst [vmem:[%s1392_s11 + $0x8] sm:$0xff] %v614_v47 }
 0x2cb   : > { %s1458_s24 = smov (!%p628_p7, %s627_s24), 2 }
 0x2cc   : > { %s883_s16 = sshll.u32 %s1458_s24, 7 }
 0x2cd   : > { %p886_p9 = scmp.eq.s32.totalorder %s883_s16, 0 }
 0x2ce   : > { %s1409_s17 = sshrl.u32 (!%p886_p9), %s1458_s24, 1 }
 0x2cf   : > { %636 = sbr.rel (%p886_p9) target bundleno = 764 (0x2fc), region = 60  ;;  %p887_p13 = scmp.le.s32.totalorder (!%p886_p9), %s1409_s17, 0 }
 0x2d6   : > { %797 = sbr.rel (%p887_p13) target bundleno = 743 (0x2e7), region = 137  ;;  %s1179_s27 = smov (!%p887_p13), %s1403_s15  }
 0x2d7   : > { %s1183_s9 = smov (!%p887_p13), %s1392_s11   ;;  %s1187_s30 = smov (!%p887_p13), 0  }
 0x2d8   : > { %s1191_s18 = smov (!%p887_p13), 0  }
 0x2dd LB: >> { %v700_v49 = vld [vmem:[%s1185_s9] sm:$0xff]  ;;  %v702_v50 = vld [vmem:[%s1185_s9 + $0x8] sm:$0xff]  ;;  %s704_s19 = sadd.s32 1, %s1189_s30  ;;  %s694_s18 = sadd.s32 1, %s1193_s18   ;;  %s1193_s18 = sphi %s1191_s18, %s694_s18   ;;  %s1189_s30 = sphi %s1187_s30, %s1188_s30   ;;  %s1185_s9 = sphi %s1183_s9, %s709_s9   ;;  %s1181_s27 = sphi %s1179_s27, %s710_s27  }
 0x2de   : >> { %701 = vst [vmem:[%s1181_s27] sm:$0xff] %v700_v49  ;;  %703 = vst [vmem:[%s1181_s27 + $0x8] sm:$0xff] %v702_v50  ;;  %p705_p0 = scmp.ge.s32.totalorder %s704_s19, %s1409_s17  ;;  %p693_p1 = scmp.ge.s32.totalorder %s694_s18, %s1409_s17 }
 0x2e0   : >> { %s1460_s19 = smov (%p705_p0, %s704_s19), 0  ;;  %696 = sbr.rel (!%p693_p1) target bundleno = 733 (0x2dd), region = 143 }
 0x2e1   : >> { %s888_s20 = sshll.u32 %s1460_s19, 4  ;;  %s1188_s30 = smov %s1460_s19  }
 0x2e2   : >> { %s709_s9 = scalar_lea.vmem %s1392_s11, %s888_s20 [#allocation4]   ;;  %s710_s27 = scalar_lea.vmem %s1403_s15, %s888_s20  }
 0x2e7 PF: > { %s1419_s21 = sand.u32 1, %s1458_s24   ;;  %s899_s22 = sshll.u32 %s1409_s17, 4 }
 0x2e8   : > { %s715_s23 = scalar_lea.vmem %s1392_s11, %s899_s22 [#allocation4]   ;;  %s717_s26 = scalar_lea.vmem %s1403_s15, %s899_s22  }
 0x2e9   : > { %p893_p2 = scmp.le.s32.totalorder %s1419_s21, 0 }
 0x2ea   : > { %s1195_s29 = smov (!%p893_p2), %s717_s26   ;;  %s1199_s10 = smov (!%p893_p2), %s715_s23  }
 0x2eb   : > { %811 = sbr.rel (%p893_p2) target bundleno = 764 (0x2fc), region = 148  ;;  %s1203_s12 = smov (!%p893_p2), 0  }
 0x2ec   : > { %s1207_s13 = smov (!%p893_p2), 0  }
 0x2f2 LB: >> { %v727_v51 = vld [vmem:[%s1201_s10] sm:$0xff]  ;;  %s729_s24 = sadd.s32 1, %s1205_s12  ;;  %s721_s13 = sadd.s32 1, %s1209_s13   ;;  %s1209_s13 = sphi %s1207_s13, %s721_s13   ;;  %s1205_s12 = sphi %s1203_s12, %s1204_s12   ;;  %s1201_s10 = sphi %s1199_s10, %s734_s10   ;;  %s1197_s29 = sphi %s1195_s29, %s735_s29  }
 0x2f3   : >> { %728 = vst [vmem:[%s1197_s29] sm:$0xff] %v727_v51  ;;  %p730_p3 = scmp.ge.s32.totalorder %s729_s24, %s1419_s21  ;;  %p720_p5 = scmp.ge.s32.totalorder %s721_s13, %s1419_s21 }
 0x2f5   : >> { %s1462_s24 = smov (%p730_p3, %s729_s24), 0  ;;  %723 = sbr.rel (!%p720_p5) target bundleno = 754 (0x2f2), region = 154 }
 0x2f6   : >> { %s894_s11 = sshll.u32 %s1462_s24, 3  ;;  %s1204_s12 = smov %s1462_s24  }
 0x2f7   : >> { %s734_s10 = scalar_lea.vmem %s715_s23, %s894_s11 [#allocation4]   ;;  %s735_s29 = scalar_lea.vmem %s717_s26, %s894_s11  }
 0x2fc PF: > { %p15_p8 = scmp.ge.s32.totalorder %s1271_s28, 5   ;;  %s1454_s24 = smov %s1173_s25 }
 0x2fd   : > { %s1455_s25 = smov %s1279_s8  ;;  %s1456_s26 = smov %s1271_s28 }
 0x2fe   :  { %17 = sbr.rel (!%p15_p8) target bundleno = 2 (0x2), region = 165 }
 0x305   :  { %751 = vsyncpa [#allocation3], 1 }
 0x306   :  { %753 = vsyncpa [#allocation3 + $0x1], 1 }

</bundles_post_ra>
